<compile_context>
chip_gen: v7x
topology: tpu7x:2x2x1
jax: 0.10.0
libtpu: 0.0.40
codegen_flags: <defaults>
</compile_context>

<pallas_src>
import jax
import jax.numpy as jnp
from jax.experimental import pallas as pl
from jax.experimental.pallas import tpu as pltpu


NEG_SLOPE = 0.01                  # torch.nn.LeakyReLU default
MATMUL_DTYPE = jnp.bfloat16       # MXU-native; accumulation stays f32


def _leaky_relu(x):
    # max(x, a*x) == LeakyReLU(x) for 0 < a < 1 (1 mul + 1 max on the VPU)
    return jnp.maximum(x, NEG_SLOPE * x)


def _mm(a, b):
    return jnp.dot(a.astype(MATMUL_DTYPE), b.astype(MATMUL_DTYPE),
                   preferred_element_type=jnp.float32)


# ---------------------------------------------------------------------------
# Fused per-graph kernel: conv1 -> conv2 -> node MLP  &  graph readout
# ---------------------------------------------------------------------------
def gnn_kernel(adj_ref, x_ref,
               c1_ref, c2_ref,
               n1_ref, n2_ref, n3_ref,
               g1_ref, g2_ref, g3_ref,
               nodes_ref, graph_ref):
    adj = adj_ref[...]                       # (N, N) adjacency of this graph
    h = x_ref[...]                           # (N, nfeat)

    def dense(v, wb_ref):
        fin = wb_ref.shape[0] - 1            # static
        wb = wb_ref[...]                     # (fin+1, fout): [W; b]
        y = _mm(v, wb[:fin, :]) + wb[fin:, :]
        return _leaky_relu(y)

    def conv(v, wb_ref):
        fin = wb_ref.shape[0] - 1
        wb = wb_ref[...]
        y = _mm(adj, _mm(v, wb[:fin, :])) + wb[fin:, :]   # adj @ (h @ W) + b
        return _leaky_relu(y)

    # conv stack (dropout is identity in eval mode; no skip / gru)
    h = conv(h, c1_ref)                      # (N, NHID)
    h = conv(h, c2_ref)                      # (N, NHID) -- stays in VMEM

    # per-node readout MLP (unpadded store)
    n = dense(h, n1_ref)
    n = dense(n, n2_ref)
    n = dense(n, n3_ref)
    nodes_ref[...] = n                       # (N, nodes_out)

    # graph readout: sum-pool over this graph's nodes, then MLP
    # TODO(synk): real S2SReadout is an LSTM-based Set2Set; using sum pooling.
    g = jnp.sum(h, axis=0, keepdims=True)    # (1, NHID)
    g = dense(g, g1_ref)
    g = dense(g, g2_ref)
    g = dense(g, g3_ref)
    graph_ref[...] = g                       # (1, graph_out)


# ---------------------------------------------------------------------------
# Wrapper: layout plumbing + one pallas_call gridded over the batch
# ---------------------------------------------------------------------------
def _pack(w, b):
    """Merge a layer's (fin, fout) weight and (1, fout) bias into one slab."""
    return jnp.concatenate([w, b], axis=0)   # (fin+1, fout)


def gnn_forward(params, x, adj):
    """x: (B, N, nfeat) float32, adj: (B, N, N) float32."""
    B, N, nfeat = x.shape

    (cw1, cb1), (cw2, cb2) = params["conv1"], params["conv2"]
    (nw1, nb1), (nw2, nb2), (nw3, nb3) = params["node_mlp"]
    (gw1, gb1), (gw2, gb2), (gw3, gb3) = params["graph_mlp"]
    nodes_out = nw3.shape[1]
    graph_out = gw3.shape[1]

    slabs = [_pack(cw1, cb1), _pack(cw2, cb2),
             _pack(nw1, nb1), _pack(nw2, nb2), _pack(nw3, nb3),
             _pack(gw1, gb1), _pack(gw2, gb2), _pack(gw3, gb3)]

    def per_batch(shape):                    # (1, *shape) block, batch squeezed
        return pl.BlockSpec((None,) + shape,
                            lambda b: (b,) + (0,) * len(shape))

    def resident(arr):                       # full array, constant index_map
        return pl.BlockSpec(arr.shape, lambda b: (0,) * arr.ndim)

    nodes, graph = pl.pallas_call(
        gnn_kernel,
        grid=(B,),
        out_shape=(jax.ShapeDtypeStruct((B, N, nodes_out), jnp.float32),
                   jax.ShapeDtypeStruct((B, 1, graph_out), jnp.float32)),
        in_specs=[per_batch((N, N)),          # adj[b]
                  per_batch((N, nfeat))]      # x[b]
                 + [resident(s) for s in slabs],
        out_specs=(per_batch((N, nodes_out)),
                   per_batch((1, graph_out))),
        compiler_params=pltpu.CompilerParams(
            dimension_semantics=("parallel",)),   # 2x on v7x (2 TCs/chip)
    )(adj, x, *slabs)

    return nodes, graph.reshape(B, graph_out)


# ---------------------------------------------------------------------------
# Parameter init + pure-JAX reference
# ---------------------------------------------------------------------------
def init_params(key, nfeat, nhid, nodes_out, graph_out):
    def dense(k, fin, fout):
        kw, kb = jax.random.split(k)
        scale = 1.0 / jnp.sqrt(jnp.float32(fin))
        w = jax.random.uniform(kw, (fin, fout), jnp.float32, -scale, scale)
        b = jax.random.uniform(kb, (1, fout), jnp.float32, -scale, scale)
        return w, b

    ks = jax.random.split(key, 8)
    return {
        "conv1": dense(ks[0], nfeat, nhid),
        "conv2": dense(ks[1], nhid, nhid),
        "node_mlp": (dense(ks[2], nhid, nhid),
                     dense(ks[3], nhid, nhid),
                     dense(ks[4], nhid, nodes_out)),
        "graph_mlp": (dense(ks[5], nhid, nhid),
                      dense(ks[6], nhid, nhid),
                      dense(ks[7], nhid, graph_out)),
    }


def gnn_reference(params, x, adj):
    def conv(h, w, b):
        return _leaky_relu(jnp.einsum("bij,bjf->bif", adj, h) @ w + b)

    def dense(v, w, b):
        return _leaky_relu(v @ w + b)

    h = conv(x, *params["conv1"])
    h = conv(h, *params["conv2"])
    (nw1, nb1), (nw2, nb2), (nw3, nb3) = params["node_mlp"]
    nodes = dense(dense(dense(h, nw1, nb1), nw2, nb2), nw3, nb3)
    pooled = jnp.sum(h, axis=1)
    (gw1, gb1), (gw2, gb2), (gw3, gb3) = params["graph_mlp"]
    graph = dense(dense(dense(pooled, gw1, gb1), gw2, gb2), gw3, gb3)
    return nodes, graph


if __name__ == "__main__":
    B, N = 2, 16
    NFEAT, NHID = 8, 32
    NODES_OUT, GRAPH_OUT = 4, 3

    key = jax.random.PRNGKey(0)
    kx, ka, kp = jax.random.split(key, 3)

    x = jax.random.normal(kx, (B, N, NFEAT), jnp.float32)
    # random dense adjacency with self loops, row-normalized
    raw = (jax.random.uniform(ka, (B, N, N)) > 0.7).astype(jnp.float32)
    raw = raw + jnp.eye(N, dtype=jnp.float32)[None]
    adj = raw / jnp.sum(raw, axis=-1, keepdims=True)

    params = init_params(kp, NFEAT, NHID, NODES_OUT, GRAPH_OUT)

    nodes_pred, graph_pred = jax.jit(gnn_forward)(params, x, adj)
    jax.block_until_ready((nodes_pred, graph_pred))

    assert nodes_pred.shape == (B, N, NODES_OUT)
    assert graph_pred.shape == (B, GRAPH_OUT)

    # correctness against a pure-JAX f32 reference
    # (loose tol: kernel matmuls run bf16 on the MXU with f32 accumulation)
    nodes_ref, graph_ref = jax.jit(gnn_reference)(params, x, adj)
    assert jnp.allclose(nodes_pred, nodes_ref, rtol=3e-2, atol=3e-2)
    assert jnp.allclose(graph_pred, graph_ref, rtol=3e-2, atol=3e-2)

    print("KERNEL_OK")
</pallas_src>

<mosaic_0001>
module attributes {stable_mosaic.version = 11 : i64} {
  func.func @gnn_kernel(%arg0: i32, %arg1: memref<1x16x16xf32, #tpu.memory_space<vmem>>, %arg2: memref<1x16x8xf32, #tpu.memory_space<vmem>>, %arg3: memref<9x32xf32, #tpu.memory_space<vmem>>, %arg4: memref<33x32xf32, #tpu.memory_space<vmem>>, %arg5: memref<33x32xf32, #tpu.memory_space<vmem>>, %arg6: memref<33x32xf32, #tpu.memory_space<vmem>>, %arg7: memref<33x4xf32, #tpu.memory_space<vmem>>, %arg8: memref<33x32xf32, #tpu.memory_space<vmem>>, %arg9: memref<33x32xf32, #tpu.memory_space<vmem>>, %arg10: memref<33x3xf32, #tpu.memory_space<vmem>>, %arg11: memref<1x16x4xf32, #tpu.memory_space<vmem>>, %arg12: memref<1x1x3xf32, #tpu.memory_space<vmem>>) attributes {dimension_semantics = [#tpu.dimension_semantics<parallel>], iteration_bounds = array<i64: 2>, scalar_prefetch = 0 : i64, scratch_operands = 0 : i64, tpu.core_type = #tpu.core_type<tc>, window_params = [{transform_indices = @transform_0, window_bounds = array<i64: 1, 16, 16>}, {transform_indices = @transform_1, window_bounds = array<i64: 1, 16, 8>}, {pipeline_mode = #tpu.pipeline_mode<synchronous>, transform_indices = @transform_2, window_bounds = array<i64: 9, 32>}, {pipeline_mode = #tpu.pipeline_mode<synchronous>, transform_indices = @transform_3, window_bounds = array<i64: 33, 32>}, {pipeline_mode = #tpu.pipeline_mode<synchronous>, transform_indices = @transform_4, window_bounds = array<i64: 33, 32>}, {pipeline_mode = #tpu.pipeline_mode<synchronous>, transform_indices = @transform_5, window_bounds = array<i64: 33, 32>}, {pipeline_mode = #tpu.pipeline_mode<synchronous>, transform_indices = @transform_6, window_bounds = array<i64: 33, 4>}, {pipeline_mode = #tpu.pipeline_mode<synchronous>, transform_indices = @transform_7, window_bounds = array<i64: 33, 32>}, {pipeline_mode = #tpu.pipeline_mode<synchronous>, transform_indices = @transform_8, window_bounds = array<i64: 33, 32>}, {pipeline_mode = #tpu.pipeline_mode<synchronous>, transform_indices = @transform_9, window_bounds = array<i64: 33, 3>}, {transform_indices = @transform_10, window_bounds = array<i64: 1, 16, 4>}, {transform_indices = @transform_11, window_bounds = array<i64: 1, 1, 3>}]} {
    %c0 = arith.constant 0 : index
    %c0_0 = arith.constant 0 : index
    %c0_1 = arith.constant 0 : index
    %0 = vector.load %arg1[%c0, %c0_0, %c0_1] : memref<1x16x16xf32, #tpu.memory_space<vmem>>, vector<1x16x16xf32>
    %1 = vector.shape_cast %0 : vector<1x16x16xf32> to vector<16x16xf32>
    %c0_2 = arith.constant 0 : index
    %c0_3 = arith.constant 0 : index
    %c0_4 = arith.constant 0 : index
    %2 = vector.load %arg2[%c0_2, %c0_3, %c0_4] : memref<1x16x8xf32, #tpu.memory_space<vmem>>, vector<1x16x8xf32>
    %3 = vector.shape_cast %2 : vector<1x16x8xf32> to vector<16x8xf32>
    %c0_5 = arith.constant 0 : index
    %c0_6 = arith.constant 0 : index
    %4 = vector.load %arg3[%c0_5, %c0_6] : memref<9x32xf32, #tpu.memory_space<vmem>>, vector<9x32xf32>
    %5 = vector.extract_strided_slice %4 {offsets = [0, 0], sizes = [8, 32], strides = [1, 1]} : vector<9x32xf32> to vector<8x32xf32>
    %6 = arith.truncf %3 : vector<16x8xf32> to vector<16x8xbf16>
    %7 = arith.truncf %5 : vector<8x32xf32> to vector<8x32xbf16>
    %cst = arith.constant dense<0.000000e+00> : vector<16x32xf32>
    %8 = tpu.matmul %6, %7, %cst {dimension_numbers = #tpu.dot_dimension_numbers<[1], [0], [0], [1], [0, 0, 1, 1], [], []>} : vector<16x8xbf16>, vector<8x32xbf16>, vector<16x32xf32> -> vector<16x32xf32>
    %9 = arith.truncf %1 : vector<16x16xf32> to vector<16x16xbf16>
    %10 = arith.truncf %8 : vector<16x32xf32> to vector<16x32xbf16>
    %cst_7 = arith.constant dense<0.000000e+00> : vector<16x32xf32>
    %11 = tpu.matmul %9, %10, %cst_7 {dimension_numbers = #tpu.dot_dimension_numbers<[1], [0], [0], [1], [0, 0, 1, 1], [], []>} : vector<16x16xbf16>, vector<16x32xbf16>, vector<16x32xf32> -> vector<16x32xf32>
    %12 = vector.extract_strided_slice %4 {offsets = [8, 0], sizes = [1, 32], strides = [1, 1]} : vector<9x32xf32> to vector<1x32xf32>
    %13 = vector.broadcast %12 : vector<1x32xf32> to vector<16x32xf32>
    %14 = arith.addf %11, %13 : vector<16x32xf32>
    %cst_8 = arith.constant 0.00999999977 : f32
    %15 = vector.broadcast %cst_8 : f32 to vector<16x32xf32>
    %16 = arith.mulf %15, %14 : vector<16x32xf32>
    %17 = arith.maximumf %14, %16 : vector<16x32xf32>
    %c0_9 = arith.constant 0 : index
    %c0_10 = arith.constant 0 : index
    %18 = vector.load %arg4[%c0_9, %c0_10] : memref<33x32xf32, #tpu.memory_space<vmem>>, vector<33x32xf32>
    %19 = vector.extract_strided_slice %18 {offsets = [0, 0], sizes = [32, 32], strides = [1, 1]} : vector<33x32xf32> to vector<32x32xf32>
    %20 = arith.truncf %17 : vector<16x32xf32> to vector<16x32xbf16>
    %21 = arith.truncf %19 : vector<32x32xf32> to vector<32x32xbf16>
    %cst_11 = arith.constant dense<0.000000e+00> : vector<16x32xf32>
    %22 = tpu.matmul %20, %21, %cst_11 {dimension_numbers = #tpu.dot_dimension_numbers<[1], [0], [0], [1], [0, 0, 1, 1], [], []>} : vector<16x32xbf16>, vector<32x32xbf16>, vector<16x32xf32> -> vector<16x32xf32>
    %23 = arith.truncf %1 : vector<16x16xf32> to vector<16x16xbf16>
    %24 = arith.truncf %22 : vector<16x32xf32> to vector<16x32xbf16>
    %cst_12 = arith.constant dense<0.000000e+00> : vector<16x32xf32>
    %25 = tpu.matmul %23, %24, %cst_12 {dimension_numbers = #tpu.dot_dimension_numbers<[1], [0], [0], [1], [0, 0, 1, 1], [], []>} : vector<16x16xbf16>, vector<16x32xbf16>, vector<16x32xf32> -> vector<16x32xf32>
    %26 = vector.extract_strided_slice %18 {offsets = [32, 0], sizes = [1, 32], strides = [1, 1]} : vector<33x32xf32> to vector<1x32xf32>
    %27 = vector.broadcast %26 : vector<1x32xf32> to vector<16x32xf32>
    %28 = arith.addf %25, %27 : vector<16x32xf32>
    %cst_13 = arith.constant 0.00999999977 : f32
    %29 = vector.broadcast %cst_13 : f32 to vector<16x32xf32>
    %30 = arith.mulf %29, %28 : vector<16x32xf32>
    %31 = arith.maximumf %28, %30 : vector<16x32xf32>
    %c0_14 = arith.constant 0 : index
    %c0_15 = arith.constant 0 : index
    %32 = vector.load %arg5[%c0_14, %c0_15] : memref<33x32xf32, #tpu.memory_space<vmem>>, vector<33x32xf32>
    %33 = vector.extract_strided_slice %32 {offsets = [0, 0], sizes = [32, 32], strides = [1, 1]} : vector<33x32xf32> to vector<32x32xf32>
    %34 = arith.truncf %31 : vector<16x32xf32> to vector<16x32xbf16>
    %35 = arith.truncf %33 : vector<32x32xf32> to vector<32x32xbf16>
    %cst_16 = arith.constant dense<0.000000e+00> : vector<16x32xf32>
    %36 = tpu.matmul %34, %35, %cst_16 {dimension_numbers = #tpu.dot_dimension_numbers<[1], [0], [0], [1], [0, 0, 1, 1], [], []>} : vector<16x32xbf16>, vector<32x32xbf16>, vector<16x32xf32> -> vector<16x32xf32>
    %37 = vector.extract_strided_slice %32 {offsets = [32, 0], sizes = [1, 32], strides = [1, 1]} : vector<33x32xf32> to vector<1x32xf32>
    %38 = vector.broadcast %37 : vector<1x32xf32> to vector<16x32xf32>
    %39 = arith.addf %36, %38 : vector<16x32xf32>
    %cst_17 = arith.constant 0.00999999977 : f32
    %40 = vector.broadcast %cst_17 : f32 to vector<16x32xf32>
    %41 = arith.mulf %40, %39 : vector<16x32xf32>
    %42 = arith.maximumf %39, %41 : vector<16x32xf32>
    %c0_18 = arith.constant 0 : index
    %c0_19 = arith.constant 0 : index
    %43 = vector.load %arg6[%c0_18, %c0_19] : memref<33x32xf32, #tpu.memory_space<vmem>>, vector<33x32xf32>
    %44 = vector.extract_strided_slice %43 {offsets = [0, 0], sizes = [32, 32], strides = [1, 1]} : vector<33x32xf32> to vector<32x32xf32>
    %45 = arith.truncf %42 : vector<16x32xf32> to vector<16x32xbf16>
    %46 = arith.truncf %44 : vector<32x32xf32> to vector<32x32xbf16>
    %cst_20 = arith.constant dense<0.000000e+00> : vector<16x32xf32>
    %47 = tpu.matmul %45, %46, %cst_20 {dimension_numbers = #tpu.dot_dimension_numbers<[1], [0], [0], [1], [0, 0, 1, 1], [], []>} : vector<16x32xbf16>, vector<32x32xbf16>, vector<16x32xf32> -> vector<16x32xf32>
    %48 = vector.extract_strided_slice %43 {offsets = [32, 0], sizes = [1, 32], strides = [1, 1]} : vector<33x32xf32> to vector<1x32xf32>
    %49 = vector.broadcast %48 : vector<1x32xf32> to vector<16x32xf32>
    %50 = arith.addf %47, %49 : vector<16x32xf32>
    %cst_21 = arith.constant 0.00999999977 : f32
    %51 = vector.broadcast %cst_21 : f32 to vector<16x32xf32>
    %52 = arith.mulf %51, %50 : vector<16x32xf32>
    %53 = arith.maximumf %50, %52 : vector<16x32xf32>
    %c0_22 = arith.constant 0 : index
    %c0_23 = arith.constant 0 : index
    %54 = vector.load %arg7[%c0_22, %c0_23] : memref<33x4xf32, #tpu.memory_space<vmem>>, vector<33x4xf32>
    %55 = vector.extract_strided_slice %54 {offsets = [0, 0], sizes = [32, 4], strides = [1, 1]} : vector<33x4xf32> to vector<32x4xf32>
    %56 = arith.truncf %53 : vector<16x32xf32> to vector<16x32xbf16>
    %57 = arith.truncf %55 : vector<32x4xf32> to vector<32x4xbf16>
    %cst_24 = arith.constant dense<0.000000e+00> : vector<16x4xf32>
    %58 = tpu.matmul %56, %57, %cst_24 {dimension_numbers = #tpu.dot_dimension_numbers<[1], [0], [0], [1], [0, 0, 1, 1], [], []>} : vector<16x32xbf16>, vector<32x4xbf16>, vector<16x4xf32> -> vector<16x4xf32>
    %59 = vector.extract_strided_slice %54 {offsets = [32, 0], sizes = [1, 4], strides = [1, 1]} : vector<33x4xf32> to vector<1x4xf32>
    %60 = vector.broadcast %59 : vector<1x4xf32> to vector<16x4xf32>
    %61 = arith.addf %58, %60 : vector<16x4xf32>
    %cst_25 = arith.constant 0.00999999977 : f32
    %62 = vector.broadcast %cst_25 : f32 to vector<16x4xf32>
    %63 = arith.mulf %62, %61 : vector<16x4xf32>
    %64 = arith.maximumf %61, %63 : vector<16x4xf32>
    %c0_26 = arith.constant 0 : index
    %c0_27 = arith.constant 0 : index
    %c0_28 = arith.constant 0 : index
    %65 = vector.load %arg11[%c0_26, %c0_27, %c0_28] : memref<1x16x4xf32, #tpu.memory_space<vmem>>, vector<1x16x4xf32>
    %66 = vector.shape_cast %65 : vector<1x16x4xf32> to vector<16x4xf32>
    %67 = vector.shape_cast %64 : vector<16x4xf32> to vector<1x16x4xf32>
    tpu.vector_store %arg11[%c0_26, %c0_27, %c0_28], %67 {strides = array<i32>} : memref<1x16x4xf32, #tpu.memory_space<vmem>>, vector<1x16x4xf32>,
    %cst_29 = arith.constant dense<0.000000e+00> : vector<32xf32>
    %68 = vector.multi_reduction <add>, %31, %cst_29 [0] : vector<16x32xf32> to vector<32xf32>
    %69 = vector.shape_cast %68 : vector<32xf32> to vector<1x32xf32>
    %c0_30 = arith.constant 0 : index
    %c0_31 = arith.constant 0 : index
    %70 = vector.load %arg8[%c0_30, %c0_31] : memref<33x32xf32, #tpu.memory_space<vmem>>, vector<33x32xf32>
    %71 = vector.extract_strided_slice %70 {offsets = [0, 0], sizes = [32, 32], strides = [1, 1]} : vector<33x32xf32> to vector<32x32xf32>
    %72 = arith.truncf %69 : vector<1x32xf32> to vector<1x32xbf16>
    %73 = arith.truncf %71 : vector<32x32xf32> to vector<32x32xbf16>
    %cst_32 = arith.constant dense<0.000000e+00> : vector<1x32xf32>
    %74 = tpu.matmul %72, %73, %cst_32 {dimension_numbers = #tpu.dot_dimension_numbers<[1], [0], [0], [1], [0, 0, 1, 1], [], []>} : vector<1x32xbf16>, vector<32x32xbf16>, vector<1x32xf32> -> vector<1x32xf32>
    %75 = vector.extract_strided_slice %70 {offsets = [32, 0], sizes = [1, 32], strides = [1, 1]} : vector<33x32xf32> to vector<1x32xf32>
    %76 = arith.addf %74, %75 : vector<1x32xf32>
    %cst_33 = arith.constant 0.00999999977 : f32
    %77 = vector.broadcast %cst_33 : f32 to vector<1x32xf32>
    %78 = arith.mulf %77, %76 : vector<1x32xf32>
    %79 = arith.maximumf %76, %78 : vector<1x32xf32>
    %c0_34 = arith.constant 0 : index
    %c0_35 = arith.constant 0 : index
    %80 = vector.load %arg9[%c0_34, %c0_35] : memref<33x32xf32, #tpu.memory_space<vmem>>, vector<33x32xf32>
    %81 = vector.extract_strided_slice %80 {offsets = [0, 0], sizes = [32, 32], strides = [1, 1]} : vector<33x32xf32> to vector<32x32xf32>
    %82 = arith.truncf %79 : vector<1x32xf32> to vector<1x32xbf16>
    %83 = arith.truncf %81 : vector<32x32xf32> to vector<32x32xbf16>
    %cst_36 = arith.constant dense<0.000000e+00> : vector<1x32xf32>
    %84 = tpu.matmul %82, %83, %cst_36 {dimension_numbers = #tpu.dot_dimension_numbers<[1], [0], [0], [1], [0, 0, 1, 1], [], []>} : vector<1x32xbf16>, vector<32x32xbf16>, vector<1x32xf32> -> vector<1x32xf32>
    %85 = vector.extract_strided_slice %80 {offsets = [32, 0], sizes = [1, 32], strides = [1, 1]} : vector<33x32xf32> to vector<1x32xf32>
    %86 = arith.addf %84, %85 : vector<1x32xf32>
    %cst_37 = arith.constant 0.00999999977 : f32
    %87 = vector.broadcast %cst_37 : f32 to vector<1x32xf32>
    %88 = arith.mulf %87, %86 : vector<1x32xf32>
    %89 = arith.maximumf %86, %88 : vector<1x32xf32>
    %c0_38 = arith.constant 0 : index
    %c0_39 = arith.constant 0 : index
    %90 = vector.load %arg10[%c0_38, %c0_39] : memref<33x3xf32, #tpu.memory_space<vmem>>, vector<33x3xf32>
    %91 = vector.extract_strided_slice %90 {offsets = [0, 0], sizes = [32, 3], strides = [1, 1]} : vector<33x3xf32> to vector<32x3xf32>
    %92 = arith.truncf %89 : vector<1x32xf32> to vector<1x32xbf16>
    %93 = arith.truncf %91 : vector<32x3xf32> to vector<32x3xbf16>
    %cst_40 = arith.constant dense<0.000000e+00> : vector<1x3xf32>
    %94 = tpu.matmul %92, %93, %cst_40 {dimension_numbers = #tpu.dot_dimension_numbers<[1], [0], [0], [1], [0, 0, 1, 1], [], []>} : vector<1x32xbf16>, vector<32x3xbf16>, vector<1x3xf32> -> vector<1x3xf32>
    %95 = vector.extract_strided_slice %90 {offsets = [32, 0], sizes = [1, 3], strides = [1, 1]} : vector<33x3xf32> to vector<1x3xf32>
    %96 = arith.addf %94, %95 : vector<1x3xf32>
    %cst_41 = arith.constant 0.00999999977 : f32
    %97 = vector.broadcast %cst_41 : f32 to vector<1x3xf32>
    %98 = arith.mulf %97, %96 : vector<1x3xf32>
    %99 = arith.maximumf %96, %98 : vector<1x3xf32>
    %c0_42 = arith.constant 0 : index
    %c0_43 = arith.constant 0 : index
    %c0_44 = arith.constant 0 : index
    %100 = vector.load %arg12[%c0_42, %c0_43, %c0_44] : memref<1x1x3xf32, #tpu.memory_space<vmem>>, vector<1x1x3xf32>
    %101 = vector.shape_cast %100 : vector<1x1x3xf32> to vector<1x3xf32>
    %102 = vector.shape_cast %99 : vector<1x3xf32> to vector<1x1x3xf32>
    tpu.vector_store %arg12[%c0_42, %c0_43, %c0_44], %102 {strides = array<i32>} : memref<1x1x3xf32, #tpu.memory_space<vmem>>, vector<1x1x3xf32>,
    return
  }
  func.func @transform_0(%arg0: i32) -> (i32, i32, i32) {
    %c0_i32 = arith.constant 0 : i32
    %c0_i32_0 = arith.constant 0 : i32
    %c0_i32_1 = arith.constant 0 : i32
    return %arg0, %c0_i32, %c0_i32_0 : i32, i32, i32
  }
  func.func @transform_1(%arg0: i32) -> (i32, i32, i32) {
    %c0_i32 = arith.constant 0 : i32
    %c0_i32_0 = arith.constant 0 : i32
    %c0_i32_1 = arith.constant 0 : i32
    return %arg0, %c0_i32, %c0_i32_0 : i32, i32, i32
  }
  func.func @transform_2(%arg0: i32) -> (i32, i32) {
    %c0_i32 = arith.constant 0 : i32
    %c0_i32_0 = arith.constant 0 : i32
    %c0_i32_1 = arith.constant 0 : i32
    return %c0_i32, %c0_i32_0 : i32, i32
  }
  func.func @transform_3(%arg0: i32) -> (i32, i32) {
    %c0_i32 = arith.constant 0 : i32
    %c0_i32_0 = arith.constant 0 : i32
    %c0_i32_1 = arith.constant 0 : i32
    return %c0_i32, %c0_i32_0 : i32, i32
  }
  func.func @transform_4(%arg0: i32) -> (i32, i32) {
    %c0_i32 = arith.constant 0 : i32
    %c0_i32_0 = arith.constant 0 : i32
    %c0_i32_1 = arith.constant 0 : i32
    return %c0_i32, %c0_i32_0 : i32, i32
  }
  func.func @transform_5(%arg0: i32) -> (i32, i32) {
    %c0_i32 = arith.constant 0 : i32
    %c0_i32_0 = arith.constant 0 : i32
    %c0_i32_1 = arith.constant 0 : i32
    return %c0_i32, %c0_i32_0 : i32, i32
  }
  func.func @transform_6(%arg0: i32) -> (i32, i32) {
    %c0_i32 = arith.constant 0 : i32
    %c0_i32_0 = arith.constant 0 : i32
    %c0_i32_1 = arith.constant 0 : i32
    return %c0_i32, %c0_i32_0 : i32, i32
  }
  func.func @transform_7(%arg0: i32) -> (i32, i32) {
    %c0_i32 = arith.constant 0 : i32
    %c0_i32_0 = arith.constant 0 : i32
    %c0_i32_1 = arith.constant 0 : i32
    return %c0_i32, %c0_i32_0 : i32, i32
  }
  func.func @transform_8(%arg0: i32) -> (i32, i32) {
    %c0_i32 = arith.constant 0 : i32
    %c0_i32_0 = arith.constant 0 : i32
    %c0_i32_1 = arith.constant 0 : i32
    return %c0_i32, %c0_i32_0 : i32, i32
  }
  func.func @transform_9(%arg0: i32) -> (i32, i32) {
    %c0_i32 = arith.constant 0 : i32
    %c0_i32_0 = arith.constant 0 : i32
    %c0_i32_1 = arith.constant 0 : i32
    return %c0_i32, %c0_i32_0 : i32, i32
  }
  func.func @transform_10(%arg0: i32) -> (i32, i32, i32) {
    %c0_i32 = arith.constant 0 : i32
    %c0_i32_0 = arith.constant 0 : i32
    %c0_i32_1 = arith.constant 0 : i32
    return %arg0, %c0_i32, %c0_i32_0 : i32, i32, i32
  }
  func.func @transform_11(%arg0: i32) -> (i32, i32, i32) {
    %c0_i32 = arith.constant 0 : i32
    %c0_i32_0 = arith.constant 0 : i32
    %c0_i32_1 = arith.constant 0 : i32
    return %arg0, %c0_i32, %c0_i32_0 : i32, i32, i32
  }
}

</mosaic_0001>

<bundles_post_ra>
// kernel: gnn_forward.1
= control target key start
LH: loop header
LB: loop body
LE: loop exit
PB: predicated region body
PF: predicated region fallthrough
CT: control target
= control target key end

     0   :  { %s1669_s0 = inlined_call_operand.vmem [shape: f32[2,16,16], index: 0, kind: input, shape index: {}]   ;;  %s1670_s1 = inlined_call_operand.vmem [shape: f32[2,16,8], index: 1, kind: input, shape index: {}]   ;;  %s1671_s2 = inlined_call_operand.vmem [shape: f32[9,32], index: 2, kind: input, shape index: {}]   ;;  %s1672_s3 = inlined_call_operand.vmem [shape: f32[33,32], index: 3, kind: input, shape index: {}]   ;;  %s1673_s4 = inlined_call_operand.vmem [shape: f32[33,32], index: 4, kind: input, shape index: {}]   ;;  %s1674_s5 = inlined_call_operand.vmem [shape: f32[33,32], index: 5, kind: input, shape index: {}]   ;;  %s1675_s6 = inlined_call_operand.vmem [shape: f32[33,4], index: 6, kind: input, shape index: {}]   ;;  %s1676_s7 = inlined_call_operand.vmem [shape: f32[33,32], index: 7, kind: input, shape index: {}]   ;;  %s1677_s8 = inlined_call_operand.vmem [shape: f32[33,32], index: 8, kind: input, shape index: {}]   ;;  %s1678_s9 = inlined_call_operand.vmem [shape: f32[33,3], index: 9, kind: input, shape index: {}]   ;;  %s1679_s10 = inlined_call_operand.vmem [shape: f32[2,16,4], index: 10, kind: output, shape index: {0}]   ;;  %s1680_s11 = inlined_call_operand.hbm [shape: f32[2,1,3], index: 11, kind: output, shape index: {1}]  }
   0x1   :  { %1681 = sst [smem:[#allocation5_spill]] %s1669_s0 }
   0x2   :  { %17 = vsyncpa [#allocation3], 0 }
   0x3   :  { %19 = vsyncpa [#allocation3 + $0x1], 0  ;;  %s1399_s17 = smov 0   ;;  %s1401_s18 = smov 0  }
   0x4   :  { %s1403_s19 = smov 0   ;;  %s1405_s20 = smov 0  }
   0x5 LB: > { %s1420_s21 = sadd.s32 4294967295, %s1334_s20   ;;  %s1099_s22 = sadd.s32 4294967294, %s1334_s20   ;;  %s1334_s20 = sphi %s1405_s20, %s1688_s20   ;;  %s1330_s19 = sphi %s1403_s19, %s1687_s19   ;;  %s1326_s18 = sphi %s1401_s18, %s1686_s18   ;;  %s1322_s17 = sphi %s1399_s17, %s1685_s17  }
   0x6   : > { %s1424_s23 = sadd.s32 1, %s1334_s20   ;;  %s278_s24 = sadd.s32 1, %s1330_s19 }
   0x7   : > { %s275_s25 = ssub.s32 %s1334_s20, %s1424_s23  ;;  %p288_p0 = scmp.ne.s32.totalorder %s1330_s19, %s1326_s18 }
   0x8   : > { %p276_p1 = scmp.eq.s32.totalorder %s275_s25, 0  ;;  %p289_p2 = scmp.eq.s32.totalorder %s1420_s21, 1 }
   0x9   : > { %p294_p3 = scmp.ne.s32.totalorder %s1326_s18, %s1322_s17  ;;  %p295_p4 = scmp.eq.s32.totalorder %s1099_s22, 1 }
   0xa   : > { %s1435_s26 = scalar_select %p276_p1, %s1330_s19, %s278_s24  }
   0xb   : > { %p1437_p5 = por %p289_p2, %p288_p0  ;;  %p1441_p6 = por %p295_p4, %p294_p3 }
   0xc   : > { %p1102_p7 = scmp.ge.s32.totalorder %s1334_s20, 1  ;;  %p353_p8 = scmp.lt.s32.totalorder %s1334_s20, 3 }
   0xe   : > { %p354_p9 = pnand %p1102_p7, %p353_p8 }
   0xf   : > { %v422_v0 = vld [vmem:[%s1671_s2] sm:$0xff] (!%p354_p9)  ;;  %vm430_vm0 = vcmask (!%p354_p9), 1043456   ;;  %p402_p10 = scmp.lt.s32.totalorder (!%p354_p9), %s1420_s21, 1  ;;  %v1336_v1 = vmov (!%p354_p9), 0.0   ;;  %vm1337_vm1 = vmmov (!%p354_p9), 0   ;;  %vm426_vm2 = vcmask (!%p354_p9), 64512  }
  0x10   : > { %357 = sbr.rel (%p354_p9) target bundleno = 1816 (0x718), region = 60  ;;  %1157 = vmatprep.subr.bf16.mxu0 (!%p354_p9), %v1336_v1  ;;  %v425_v2 = vpack.c.bf16 (!%p354_p9), %v422_v0, %v422_v0  ;;  %1159 = vmatprep.mubr.msk.bf16.mxu0 (!%p354_p9), %vm1337_vm1, %v1336_v1  ;;  %s1684_s0 = sld [smem:[#allocation5_spill]] (!%p354_p9)  ;;  %vm481_vm3 = vcmask (!%p354_p9), 130048   ;;  %v530_v15 = vld [vmem:[%s1672_s3] sm:$0xff] (!%p354_p9)  ;;  %v531_v16 = vld [vmem:[%s1672_s3 + $0x8] sm:$0xff] (!%p354_p9)  ;;  %v532_v18 = vld [vmem:[%s1672_s3 + $0x10] sm:$0xff] (!%p354_p9) }
  0x11   : > { %1163 = vmatprep.subr.bf16.mxu1 (!%p354_p9), %v1336_v1  ;;  %1165 = vmatprep.mubr.msk.bf16.mxu1 (!%p354_p9), %vm1337_vm1, %v1336_v1  ;;  %v536_v17 = vpack.c.bf16 (!%p354_p9), %v531_v16, %v530_v15  ;;  %v533_v19 = vld [vmem:[%s1672_s3 + $0x18] sm:$0xff] (!%p354_p9)  ;;  %v1110_v21 = vld [vmem:[%s1671_s2 + $0x8] ss:$0 sm:$0xff] (!%p354_p9)  ;;  %vm538_vm4 = vcmask (!%p354_p9), 261120   ;;  %v633_v38 = vld [vmem:[%s1673_s4] sm:$0xff] (!%p354_p9)  ;;  %vm813_vm5 = vcmask (!%p354_p9), 31744  }
  0x12   : > { %v432_v3 = vsel (!%p354_p9), %vm430_vm0, %v425_v2, 0  ;;  %v537_v20 = vpack.c.bf16 (!%p354_p9), %v533_v19, %v532_v18  ;;  %v634_v39 = vld [vmem:[%s1673_s4 + $0x8] sm:$0xff] (!%p354_p9)  ;;  %v635_v41 = vld [vmem:[%s1673_s4 + $0x10] sm:$0xff] (!%p354_p9)  ;;  %v636_v42 = vld [vmem:[%s1673_s4 + $0x18] sm:$0xff] (!%p354_p9)  ;;  %s1124_s14 = sshll.u32 (!%p354_p9), %s1420_s21, 4  ;;  %vm984_vm6 = vcmask (!%p354_p9), 16384  }
  0x13   : > { %1158 = vmatpush3.bf16.msra.mxu0 (!%p354_p9), %v432_v3  ;;  %v639_v40 = vpack.c.bf16 (!%p354_p9), %v634_v39, %v633_v38  ;;  %v640_v43 = vpack.c.bf16 (!%p354_p9), %v636_v42, %v635_v41  ;;  %v1113_v44 = vld [vmem:[%s1672_s3 + $0x20] ss:$0 sm:$0xff] (!%p354_p9)  ;;  %v694_v60 = vld [vmem:[%s1674_s5 + $0x8] sm:$0xff] (!%p354_p9)  ;;  %v695_v62 = vld [vmem:[%s1674_s5 + $0x10] sm:$0xff] (!%p354_p9) }
  0x14   : > { %1169 = vmatprep.subr.bf16.mxu0 (!%p354_p9), %v1336_v1  ;;  %v693_v59 = vld [vmem:[%s1674_s5] sm:$0xff] (!%p354_p9)  ;;  %v696_v63 = vld [vmem:[%s1674_s5 + $0x18] sm:$0xff] (!%p354_p9)  ;;  %v826_v16 = vld [vmem:[%s1676_s7 + $0x8] sm:$0xff] (!%p354_p9) }
  0x15   : > { %v699_v61 = vpack.c.bf16 (!%p354_p9), %v694_v60, %v693_v59  ;;  %v700_v0 = vpack.c.bf16 (!%p354_p9), %v696_v63, %v695_v62  ;;  %v825_v15 = vld [vmem:[%s1676_s7] sm:$0xff] (!%p354_p9)  ;;  %v933_v63 = vld [vmem:[%s1678_s9 + $0x10] sm:$0xff] (!%p354_p9) }
  0x16   : > { %v831_v19 = vpack.c.bf16 (!%p354_p9), %v826_v16, %v825_v15  ;;  %v878_v42 = vld [vmem:[%s1677_s8] sm:$0xff] (!%p354_p9) }
  0x17   : > { %s403_s12 = scalar_select %p402_p10, %s1420_s21, 1  ;;  %v931_v60 = vld [vmem:[%s1678_s9] sm:$0xff] }
  0x18   : > { %s1338_s21 = smov [#allocation2]  }
  0x19   : > { %s1458_s13 = sshll.u32 %s403_s12, 4  ;;  %s1276_s12 = sshll.u32 %s1338_s21, 4  ;;  %s1277_s12 = int_to_ptr.vmem [resolvable:$false] %s1276_s12 }
  0x1a   : > { %s411_s16 = scalar_lea.vmem %s1670_s1, %s1458_s13  ;;  %s406_s25 = scalar_lea.vmem %s1684_s0, %s1458_s13 }
  0x1b   : > { %v420_v4 = vld [vmem:[%s411_s16] sm:$0xff]  ;;  %v421_v5 = vld [vmem:[%s411_s16 + $0x8] sm:$0xff]  ;;  %s416_s24 = scalar_lea.vmem %s1679_s10, %s1458_s13  ;;  %s400_s13 = sand.u32 1, %s1326_s18  }
  0x1c   : > { %v424_v6 = vpack.c.bf16 %v421_v5, %v420_v4  ;;  %v418_v9 = vld [vmem:[%s406_s25] sm:$0xff]  ;;  %v419_v10 = vld [vmem:[%s406_s25 + $0x8] sm:$0xff]  ;;  %s401_s15 = scalar_lea.vmem [#allocation2], %s400_s13  ;;  %s1627_s25 = scalar_lea.hbm %s1680_s11, %s1124_s14 }
  0x1d   : > { %v475_v14 = vpack.c.bf16 %v419_v10, %v418_v9  ;;  %v1115_v4 = vld [vmem:[%s1673_s4 + $0x20] ss:$0 sm:$0xff]  ;;  %s1007_s16 = sshll.u32 %s401_s15, 4  ;;  %s992_s29 = scalar_lea.sflag [#allocation3], %s400_s13  ;;  %s1629_s16 = int_to_ptr.vmem [resolvable:$true] %s1007_s16 }
  0x1e   : > { %1160 = vmatmul.mubr.msk.bf16.vlgmr.msra.gmra.mrb[0].mxu0 %vm426_vm2, %v424_v6  ;;  %s1272_s30 = scalar_lea.vmem %s1629_s16, 16  ;;  %s1278_s0 = scalar_lea.vmem %s1277_s12, 32 }
  0x1f   : > { %1173 = vmatprep.mubr.msk.bf16.mxu0 %vm1337_vm1, %v1336_v1  ;;  %1170 = vmatpush3.bf16.msra.mxu0 %v536_v17  ;;  %p1273_p11 = scmp.ne.s32.totalorder %s1629_s16, %s1272_s30  ;;  %p1279_p0 = scmp.lt.s32.totalorder %s1629_s16, %s1277_s12 }
  0x20   : > { %1171 = vmatprep.subr.bf16.mxu0 %v1336_v1  ;;  %p1280_p1 = scmp.lt.s32.totalorder %s1278_s0, %s1272_s30 }
  0x21   : > { %p1274_p12 = pnand %p1273_p11, %p1437_p5 }
  0x22   : > { %p1281_p2 = por %p1280_p1, %p1279_p0 }
  0x23   : > { %1172 = vmatpush3.bf16.msra.mxu0 %v537_v20  ;;  %p1275_p13 = pneg %p1274_p12 }
  0x24   : > { %1183 = vmatprep.subr.bf16.mxu0 %v1336_v1 }
  0x25   : > { %p1282_p3 = pnand %p1281_p2, %p1275_p13 }
  0xf1   : > { %v468_v7 = vpop.f32.mrb[0].mxu0 }
  0xf2   : > { %v1161_v8 = vpop.f32.mrb[1].mxu0 }
  0xf3   : > { %v471_v11 = vpop.f32.mrb[2].mxu0 }
  0xf4   : > { %v476_v12 = vpack.c.bf16 %v471_v11, %v468_v7  ;;  %v1162_v13 = vpop.f32.mrb[3].mxu0 }
  0xf6   : > { %1164 = vmatpush3.bf16.msra.mxu1 %v476_v12 }
  0xf7   : > { %1177 = vmatprep.subr.bf16.mxu1 %v1336_v1 }
  0xf9   : > { %1166 = vmatmul.mubr.msk.bf16.vlgmr.msra.gmra.mrb[0].mxu1 %vm481_vm3, %v475_v14 }
  0xfa   : > { %1179 = vmatprep.mubr.msk.bf16.mxu1 %vm1337_vm1, %v1336_v1 }
 0x1cc   : > { %v519_v22 = vpop.f32.mrb[0].mxu1 }
 0x1cd   : > { %v520_v23 = vadd.f32 %v1110_v21, %v519_v22  ;;  %v1167_v24 = vpop.f32.mrb[1].mxu1  ;;  %v827_v22 = vld [vmem:[%s1676_s7 + $0x10] sm:$0xff] }
 0x1ce   : > { %v522_v25 = vpop.f32.mrb[2].mxu1 }
 0x1cf   : > { %v526_v26 = vmul.f32 0.01, %v520_v23  ;;  %v523_v27 = vadd.f32 %v1110_v21, %v522_v25  ;;  %v1168_v28 = vpop.f32.mrb[3].mxu1 }
 0x1d0   : > { %v754_v28 = vld [vmem:[%s1675_s6 + $0x8] sm:$0xff] }
 0x1d1   : > { %v527_v29 = vmul.f32 0.01, %v523_v27  ;;  %v528_v30 = vmax.f32 %v520_v23, %v526_v26  ;;  %v828_v23 = vld [vmem:[%s1676_s7 + $0x18] sm:$0xff] }
 0x1d2   : > { %v832_v24 = vpack.c.bf16 %v828_v23, %v827_v22  ;;  %v935_v22 = vld [vmem:[%s1678_s9 + $0x20] sm:$0x1] }
 0x1d3   : > { %v529_v31 = vmax.f32 %v523_v27, %v527_v29  ;;  %v753_v27 = vld [vmem:[%s1675_s6] sm:$0xff] }
 0x1d4   : > { %v759_v29 = vpack.c.bf16 %v754_v28, %v753_v27 }
 0x1d5   : > { %v535_v32 = vpack.c.bf16 %v529_v31, %v528_v30  ;;  %v755_v30 = vld [vmem:[%s1675_s6 + $0x10] sm:$0xff]  ;;  %v756_v31 = vld [vmem:[%s1675_s6 + $0x18] sm:$0xff] }
 0x1d7   : > { %1174 = vmatmul.mubr.msk.bf16.vlgmr.msra.gmra.mrb[4].mxu0 %vm538_vm4, %v535_v32  ;;  %v760_v32 = vpack.c.bf16 %v756_v31, %v755_v30 }
 0x1d8   : > { %1187 = vmatprep.mubr.msk.bf16.mxu0 %vm1337_vm1, %v1336_v1  ;;  %1184 = vmatpush3.bf16.msra.mxu0 %v639_v40 }
 0x1d9   : > { %1185 = vmatprep.subr.bf16.mxu0 %v1336_v1 }
 0x1dc   : > { %1186 = vmatpush3.bf16.msra.mxu0 %v640_v43  ;;  %v879_v43 = vld [vmem:[%s1677_s8 + $0x8] sm:$0xff] }
 0x1dd   : > { %1199 = vmatprep.subr.bf16.mxu0 %v1336_v1 }
 0x2aa   : > { %v576_v33 = vpop.f32.mrb[4].mxu0 }
 0x2ab   : > { %v1175_v34 = vpop.f32.mrb[5].mxu0 }
 0x2ac   : > { %v579_v35 = vpop.f32.mrb[6].mxu0 }
 0x2ad   : > { %v583_v36 = vpack.c.bf16 %v579_v35, %v576_v33  ;;  %v1176_v37 = vpop.f32.mrb[7].mxu0  ;;  %v1117_v33 = vld [vmem:[%s1674_s5 + $0x20] ss:$0 sm:$0xff] }
 0x2af   : > { %1178 = vmatpush3.bf16.msra.mxu1 %v583_v36 }
 0x2b0   : > { %1191 = vmatprep.subr.bf16.mxu1 %v1336_v1 }
 0x2b2   : > { %1180 = vmatmul.mubr.msk.bf16.vlgmr.msra.gmra.mrb[4].mxu1 %vm481_vm3, %v475_v14 }
 0x2b3   : > { %1195 = vmatprep.mubr.msk.bf16.mxu1 %vm1337_vm1, %v1336_v1  ;;  %1192 = vmatpush3.bf16.msra.mxu1 %v699_v61  ;;  %v932_v61 = vld [vmem:[%s1678_s9 + $0x8] sm:$0xff] }
 0x2b4   : > { %1193 = vmatprep.subr.bf16.mxu1 %v1336_v1  ;;  %v937_v62 = vpack.c.bf16 %v932_v61, %v931_v60 }
 0x2b7   : > { %1194 = vmatpush3.bf16.msra.mxu1 %v700_v0  ;;  %v934_v0 = vld [vmem:[%s1678_s9 + $0x18] sm:$0xff] }
 0x2b8   : > { %1207 = vmatprep.subr.bf16.mxu1 %v1336_v1 }
 0x385   : > { %v622_v45 = vpop.f32.mrb[4].mxu1 }
 0x386   : > { %v623_v46 = vadd.f32 %v1113_v44, %v622_v45  ;;  %v1181_v47 = vpop.f32.mrb[5].mxu1 }
 0x387   : > { %v625_v48 = vpop.f32.mrb[6].mxu1 }
 0x388   : > { %v629_v49 = vmul.f32 0.01, %v623_v46  ;;  %v626_v50 = vadd.f32 %v1113_v44, %v625_v48  ;;  %v1182_v51 = vpop.f32.mrb[7].mxu1  ;;  %v829_v44 = vld [vmem:[%s1676_s7 + $0x20] sm:$0x1]  ;;  %v884_v48 = vpack.c.bf16 %v879_v43, %v878_v42 }
 0x38a   : > { %v631_v52 = vmax.f32 %v623_v46, %v629_v49  ;;  %v630_v53 = vmul.f32 0.01, %v626_v50 }
 0x38c   : > { %v632_v54 = vmax.f32 %v626_v50, %v630_v53  ;;  %v816_v55 = vsel %vm538_vm4, %v631_v52, 0.0  ;;  %v881_v53 = vld [vmem:[%s1677_s8 + $0x18] sm:$0xff] }
 0x38e   : > { %v638_v56 = vpack.c.bf16 %v632_v54, %v631_v52  ;;  %v817_v57 = vsel %vm538_vm4, %v632_v54, 0.0  ;;  %v880_v52 = vld [vmem:[%s1677_s8 + $0x10] sm:$0xff] }
 0x38f   : > { %v818_v58 = vadd.f32 %v817_v57, %v816_v55  ;;  %v885_v57 = vpack.c.bf16 %v881_v53, %v880_v52 }
 0x390   : > { %1188 = vmatmul.mubr.msk.bf16.vlgmr.msra.gmra.mrb[8].mxu0 %vm538_vm4, %v638_v56 }
 0x391   : > { %1203 = vmatprep.mubr.msk.bf16.mxu0 %vm1337_vm1, %v1336_v1  ;;  %v819_v2 = vrot.slane %v818_v58, 4  ;;  %1200 = vmatpush3.bf16.msra.mxu0 %v759_v29 }
 0x392   : > { %1201 = vmatprep.subr.bf16.mxu0 %v1336_v1 }
 0x393   : > { %v820_v3 = vadd.f32 %v819_v2, %v818_v58  ;;  %v938_v2 = vpack.c.bf16 %v934_v0, %v933_v63 }
 0x395   : > { %v821_v6 = vrot.slane %v820_v3, 2  ;;  %1202 = vmatpush3.bf16.msra.mxu0 %v760_v32 }
 0x396   : > { %1215 = vmatprep.subr.bf16.mxu0 %v1336_v1 }
 0x397   : > { %v822_v13 = vadd.f32 %v821_v6, %v820_v3  ;;  %v1119_v3 = vld [vmem:[%s1675_s6 + $0x20] ss:$0 sm:$0xff] }
 0x399   : > { %v823_v20 = vrot.slane %v822_v13, 1 }
 0x39b   : > { %v824_v25 = vadd.f32 %v823_v20, %v822_v13 }
 0x39d   : > { %v830_v26 = vpack.c.bf16 %v824_v25, %v824_v25 }
 0x463   : > { %v682_v5 = vpop.f32.mrb[8].mxu0 }
 0x464   : > { %v683_v7 = vadd.f32 %v1115_v4, %v682_v5  ;;  %v1189_v8 = vpop.f32.mrb[9].mxu0 }
 0x465   : > { %v685_v9 = vpop.f32.mrb[10].mxu0 }
 0x466   : > { %v689_v10 = vmul.f32 0.01, %v683_v7  ;;  %v686_v11 = vadd.f32 %v1115_v4, %v685_v9  ;;  %v1190_v12 = vpop.f32.mrb[11].mxu0 }
 0x467   : > { %v882_v12 = vld [vmem:[%s1677_s8 + $0x20] sm:$0x1] }
 0x468   : > { %v690_v14 = vmul.f32 0.01, %v686_v11  ;;  %v691_v17 = vmax.f32 %v683_v7, %v689_v10 }
 0x46a   : > { %v692_v18 = vmax.f32 %v686_v11, %v690_v14 }
 0x46c   : > { %v698_v21 = vpack.c.bf16 %v692_v18, %v691_v17 }
 0x46e   : > { %1196 = vmatmul.mubr.msk.bf16.vlgmr.msra.gmra.mrb[8].mxu1 %vm538_vm4, %v698_v21 }
 0x46f   : > { %1208 = vmatpush3.bf16.msra.mxu1 %v831_v19  ;;  %1211 = vmatprep.mubr.msk.bf16.mxu1 %vm1337_vm1, %v1336_v1 }
 0x470   : > { %1209 = vmatprep.subr.bf16.mxu1 %v1336_v1 }
 0x473   : > { %1210 = vmatpush3.bf16.msra.mxu1 %v832_v24 }
 0x474   : > { %1223 = vmatprep.subr.bf16.mxu1 %v1336_v1 }
 0x476   : > { %1212 = vmatmul.mubr.msk.bf16.vlgmr.msra.gmra.mrb[12].mxu1 %vm538_vm4, %v830_v26 }
 0x477   : > { %1227 = vmatprep.mubr.msk.bf16.mxu1 %vm1337_vm1, %v1336_v1  ;;  %1224 = vmatpush3.bf16.msra.mxu1 %v937_v62 }
 0x478   : > { %1225 = vmatprep.subr.bf16.mxu1 %v1336_v1 }
 0x47b   : > { %1226 = vmatpush3.bf16.msra.mxu1 %v938_v2 }
 0x541   : > { %v742_v34 = vpop.f32.mrb[8].mxu1 }
 0x542   : > { %v743_v35 = vadd.f32 %v1117_v33, %v742_v34  ;;  %v1197_v36 = vpop.f32.mrb[9].mxu1 }
 0x543   : > { %v745_v37 = vpop.f32.mrb[10].mxu1 }
 0x544   : > { %v749_v38 = vmul.f32 0.01, %v743_v35  ;;  %v746_v39 = vadd.f32 %v1117_v33, %v745_v37  ;;  %v1198_v40 = vpop.f32.mrb[11].mxu1 }
 0x546   : > { %v750_v41 = vmul.f32 0.01, %v746_v39  ;;  %v751_v45 = vmax.f32 %v743_v35, %v749_v38 }
 0x548   : > { %v752_v46 = vmax.f32 %v746_v39, %v750_v41 }
 0x549   : > { %v870_v47 = vpop.f32.mrb[12].mxu1 }
 0x54a   : > { %v758_v49 = vpack.c.bf16 %v752_v46, %v751_v45  ;;  %v871_v50 = vadd.f32 %v870_v47, %v829_v44  ;;  %v1213_v51 = vpop.f32.mrb[13].mxu1 }
 0x54b   : > { %v873_v54 = vpop.f32.mrb[14].mxu1 }
 0x54c   : > { %v876_v55 = vmul.f32 0.01, %v871_v50  ;;  %1204 = vmatmul.mubr.msk.bf16.vlgmr.msra.gmra.mrb[12].mxu0 %vm538_vm4, %v758_v49  ;;  %v1214_v56 = vpop.f32.mrb[15].mxu1 }
 0x54d   : > { %1216 = vmatpush3.bf16.msra.mxu0 %v884_v48  ;;  %1219 = vmatprep.mubr.msk.bf16.mxu0 %vm1337_vm1, %v1336_v1 }
 0x54e   : > { %v877_v58 = vmax.f32 %v871_v50, %v876_v55  ;;  %1217 = vmatprep.subr.bf16.mxu0 %v1336_v1 }
 0x550   : > { %v883_v59 = vpack.c.bf16 %v877_v58, %v877_v58 }
 0x551   : > { %1218 = vmatpush3.bf16.msra.mxu0 %v885_v57 }
 0x554   : > { %1220 = vmatmul.mubr.msk.bf16.vlgmr.msra.gmra.mrb[16].mxu0 %vm538_vm4, %v883_v59 }
 0x61f   : > { %v802_v4 = vpop.f32.mrb[12].mxu0 }
 0x620   : > { %v803_v5 = vadd.f32 %v1119_v3, %v802_v4  ;;  %v1205_v6 = vpop.f32.mrb[13].mxu0 }
 0x621   : > { %v805_v7 = vpop.f32.mrb[14].mxu0 }
 0x622   : > { %v809_v8 = vmul.f32 0.01, %v803_v5  ;;  %v806_v1 = vadd.f32 %v1119_v3, %v805_v7  ;;  %v1206_v9 = vpop.f32.mrb[15].mxu0 }
 0x624   : > { %v811_v10 = vmax.f32 %v803_v5, %v809_v8  ;;  %v810_v11 = vmul.f32 0.01, %v806_v1 }
 0x626   : > { %814 = vst.msk [vmem:[%s416_s24] sm:$0xff] %vm813_vm5, %v811_v10  ;;  %v812_v13 = vmax.f32 %v806_v1, %v810_v11 }
 0x627   : > { %v923_v14 = vpop.f32.mrb[16].mxu0 }
 0x628   : > { %815 = vst.msk [vmem:[%s416_s24 + $0x8] sm:$0xff] %vm813_vm5, %v812_v13  ;;  %v924_v15 = vadd.f32 %v923_v14, %v882_v12  ;;  %v1221_v16 = vpop.f32.mrb[17].mxu0 }
 0x629   : > { %v926_v17 = vpop.f32.mrb[18].mxu0 }
 0x62a   : > { %v929_v18 = vmul.f32 0.01, %v924_v15  ;;  %v1222_v19 = vpop.f32.mrb[19].mxu0 }
 0x62c   : > { %v930_v20 = vmax.f32 %v924_v15, %v929_v18 }
 0x62e   : > { %v936_v21 = vpack.c.bf16 %v930_v20, %v930_v20 }
 0x630   : > { %1228 = vmatmul.mubr.msk.bf16.vlgmr.msra.gmra.mrb[16].mxu1 %vm538_vm4, %v936_v21 }
 0x703   : > { %v976_v23 = vpop.f32.mrb[16].mxu1 }
 0x704   : > { %v977_v24 = vadd.f32 %v976_v23, %v935_v22  ;;  %v1229_v25 = vpop.f32.mrb[17].mxu1 }
 0x705   : > { %v979_v26 = vpop.f32.mrb[18].mxu1 }
 0x706   : > { %v982_v27 = vmul.f32 0.01, %v977_v24  ;;  %v1230_v28 = vpop.f32.mrb[19].mxu1 }
 0x708   : > { %v983_v29 = vmax.f32 %v977_v24, %v982_v27 }
 0x70a   : > { %985 = vst.msk [vmem:[%s401_s15] sm:$0x1] %vm984_vm6, %v983_v29 }
 0x70b   : > { %1285 = shalt.err (!%p1282_p3)
}
 0x70c   : > { %s1286_s13 = scalar_lea.hbm %s1627_s25, 16  ;;  %s1290_s22 = scalar_lea.hbm %s1680_s11, 32 }
 0x70d   : > { %p1287_p4 = scmp.ne.s32.totalorder %s1627_s25, %s1286_s13  ;;  %p1291_p9 = scmp.lt.u32.totalorder %s1627_s25, %s1680_s11 }
 0x70e   : > { %p1292_p10 = scmp.lt.u32.totalorder %s1290_s22, %s1286_s13  ;;  %p1294_p12 = scmp.lt.u32.totalorder %s1286_s13, %s1627_s25 }
 0x70f   : > { %p1288_p7 = pnand %p1287_p4, %p1437_p5 }
 0x710   : > { %p1293_p11 = por %p1292_p10, %p1291_p9 }
 0x711   : > { %p1289_p8 = pneg %p1288_p7 }
 0x712   : > { %p1295_p13 = por %p1294_p12, %p1293_p11 }
 0x714   : > { %p1296_p0 = pnand %p1295_p13, %p1289_p8 }
 0x716   : > { %1299 = shalt.err (!%p1296_p0)
}
 0x717   : > { %1231 = dma.vmem_to_hbm [thread:$0]  (%p1437_p5), %s1629_s16, 16, %s1627_s25, %s992_s29  }
 0x718 PF: > { %p1237_p1 = scmp.ge.s32.totalorder %s1334_s20, 2  ;;  %s1027_s0 = sand.u32 1, %s1322_s17  }
 0x719   : > { %s1028_s30 = scalar_lea.sflag [#allocation3], %s1027_s0 }
 0x71a   : > { %p1234_p2 = pnand %p1237_p1, %p1441_p6 }
 0x71c   : > { %1317 = dma.done.wait (!%p1234_p2), %s1028_s30, 16  }
 0x71d   : > { %1319 = vsyncadd (!%p1234_p2), %s1028_s30, 4294967280  ;;  %p22_p3 = scmp.ge.s32.totalorder %s1424_s23, 4   ;;  %s1685_s17 = smov %s1326_s18 }
 0x71e   : > { %s1686_s18 = smov %s1330_s19  ;;  %s1687_s19 = smov %s1435_s26 }
 0x71f   : > { %s1688_s20 = smov %s1424_s23  ;;  %24 = sbr.rel (!%p22_p3) target bundleno = 5 (0x5), region = 110 }
 0x726   :  { %1032 = vsyncpa [#allocation3], 1 }
 0x727   :  { %1034 = vsyncpa [#allocation3 + $0x1], 1 }

</bundles_post_ra>
